<compile_context>
chip_gen: v7x
topology: tpu7x:2x2x1
jax: 0.10.0
libtpu: 0.0.40
codegen_flags: <defaults>
</compile_context>

<pallas_src>
import jax
import jax.numpy as jnp
from jax.experimental import pallas as pl
from jax.experimental.pallas import tpu as pltpu

# ---- small, lane-aligned synthetic sizes (stand-ins for 768 / 3072 / 300) ----
VOCAB = 64
B = 2            # batch size
S = 8            # sequence length (subword tokens)
BS = B * S       # flattened tokens
E = 128          # hidden / embedding size (lane-aligned stand-in for 768)
F = 256          # FFN intermediate size (stand-in for 3072)
H_MLP = 128      # MLP hidden size (stand-in for 300)
OUT = 4          # OUT_CLASSES
OUT_PAD = 128    # lane-dense padded output width (sliced back to OUT)
N_WORDS = 4      # words per sentence (after subword merging)
MAX_SUB = 2      # max subwords per word
N_CONF = 2       # parser configurations per sentence
N = B * N_CONF   # flattened configurations
N_PAD = 8        # sublane-padded row count for the MLP head
BIAS_W = 384     # lane width of the packed bias/vector ref


# --------------------------- in-kernel helpers ---------------------------
def _layernorm(x, g, b, eps=1e-12):
    # single-pass stats: the two cross-lane reductions are independent
    n = x.shape[-1]
    s1 = jnp.sum(x, axis=-1, keepdims=True)
    s2 = jnp.sum(x * x, axis=-1, keepdims=True)
    mu = s1 * (1.0 / n)
    var = s2 * (1.0 / n) - mu * mu
    return (x - mu) * jax.lax.rsqrt(var + eps) * g + b


def _gelu(x):
    c = 0.7978845608028654  # sqrt(2/pi)
    return 0.5 * x * (1.0 + jnp.tanh(c * (x + 0.044715 * x * x * x)))


# --------------------------- fused forward kernel ---------------------------
def bertnet_kernel(x_ref, am_ref, wa_ref, wb_ref, bias_ref, g_ref, o_ref):
    f32 = jnp.float32
    bf16 = jnp.bfloat16

    x = x_ref[...]                    # [BS, E]  f32 embeddings (flattened batch)
    am = am_ref[...]                  # [BS, BS] f32 additive attention mask

    # ---- unpack weights (lane slices at 128-multiples are free) ----
    w_qkv = wa_ref[:, 0:3 * E]                       # [E, 3E]
    wo = wa_ref[:, 3 * E:4 * E]                      # [E, E]
    wf1 = wa_ref[:, 4 * E:4 * E + F]                 # [E, F]
    w2 = wa_ref[:, 4 * E + F:4 * E + F + OUT_PAD]    # [E, OUT_PAD]
    wf2 = wb_ref[:, 0:E]                             # [F, E]
    w1 = wb_ref[:, E:E + H_MLP]                      # [2E, H_MLP]

    # ---- unpack biases / LayerNorm vectors ----
    b_qkv = bias_ref[0:1, 0:3 * E]
    bf1 = bias_ref[1:2, 0:F]
    b1 = bias_ref[2:3, 0:H_MLP]
    b2 = bias_ref[3:4, 0:OUT_PAD]       # padded classes pre-filled with -1e30
    bo = bias_ref[4:5, 0:E]
    ln1g = bias_ref[5:6, 0:E]
    ln1b = bias_ref[6:7, 0:E]
    bf2 = bias_ref[7:8, 0:E]
    ln2g = bias_ref[8:9, 0:E]
    ln2b = bias_ref[9:10, 0:E]

    # ---- fused QKV projection: one [16,128]@[128,384] MXU pass ----
    qkv = jnp.dot(x.astype(bf16), w_qkv, preferred_element_type=f32) + b_qkv
    q = qkv[:, 0:E]
    k = qkv[:, E:2 * E]
    v = qkv[:, 2 * E:3 * E]

    # ---- block-diagonal attention over the flattened batch ----
    scores = jnp.einsum('qe,ke->qk', q.astype(bf16), k.astype(bf16),
                        preferred_element_type=f32) * (1.0 / (E ** 0.5))
    scores = scores + am                               # cross-batch + padding mask
    smax = jnp.max(scores, axis=-1, keepdims=True)
    p = jnp.exp(scores - smax)
    p = p * pl.reciprocal(jnp.sum(p, axis=-1, keepdims=True), approx=True)

    a = jnp.dot(p.astype(bf16), v.astype(bf16), preferred_element_type=f32)   # [BS, E]
    a = jnp.dot(a.astype(bf16), wo, preferred_element_type=f32) + bo
    h1 = _layernorm(x + a, ln1g, ln1b)

    # ---- FFN ----
    f = _gelu(jnp.dot(h1.astype(bf16), wf1, preferred_element_type=f32) + bf1)
    f = jnp.dot(f.astype(bf16), wf2, preferred_element_type=f32) + bf2
    h2 = _layernorm(h1 + f, ln2g, ln2b)                # [BS, E]

    # ---- get_mlp_input as ONE matmul: [16,16] gather/mean-pool @ [16,128] ----
    feat = jnp.dot(g_ref[...].astype(bf16), h2.astype(bf16),
                   preferred_element_type=f32)         # [2*N_PAD, E]
    mlp_in = jnp.concatenate([feat[0:N_PAD], feat[N_PAD:2 * N_PAD]], axis=-1)  # [N_PAD, 2E]

    # ---- MLP head: softmax(w2(tanh(w1(x))))  (dropout == identity) ----
    h = jnp.tanh(jnp.dot(mlp_in.astype(bf16), w1, preferred_element_type=f32) + b1)
    logits = jnp.dot(h.astype(bf16), w2, preferred_element_type=f32) + b2     # [N_PAD, OUT_PAD]

    mx = jnp.max(logits, axis=-1, keepdims=True)
    e = jnp.exp(logits - mx)
    o_ref[...] = e / jnp.sum(e, axis=-1, keepdims=True)   # exact denom for the head


def bertnet_fused(x2d, attn_mask_add, g_pack, params):
    args = (
        x2d,                        # [BS, E]   f32
        attn_mask_add,              # [BS, BS]  f32
        params["w_pack_a"],         # [E, 896]  bf16  (w_qkv | wo | wf1 | w2)
        params["w_pack_b"],         # [F, 256]  bf16  (wf2 | w1)
        params["bias_pack"],        # [10, 384] f32
        g_pack,                     # [2*N_PAD, BS] f32
    )
    vmem = pl.BlockSpec(memory_space=pltpu.MemorySpace.VMEM)
    return pl.pallas_call(
        bertnet_kernel,
        out_shape=jax.ShapeDtypeStruct((N_PAD, OUT_PAD), jnp.float32),
        in_specs=[vmem] * len(args),
        out_specs=vmem,
    )(*args)
    # TODO(synk): add a ("parallel",) grid over batch tiles + per-layer weight
    # pipelining (vmem_limit_bytes) once the real 12-layer / 768-wide encoder
    # and realistic batch sizes land (v7x: 2 TCs, 64 MiB VMEM).


# --------------------------- jittable gather-matrix glue ---------------------------
def build_gather_matrix(configurations, subw2idx):
    """configurations: [B, N_CONF, 2] word indices (-1 == EMPTY)
       subw2idx:       [B, N_WORDS, MAX_SUB] subword positions (-1 padded)
       returns g_pack: [2*N_PAD, B*S] f32 mean-pooling selection matrix so that
       feat = g_pack @ h_flat gives (stack-top | buffer-front) word embeddings."""
    valid = (subw2idx >= 0).astype(jnp.float32)                         # [B,NW,MS]
    cnt = jnp.maximum(valid.sum(-1, keepdims=True), 1.0)                # [B,NW,1]
    flat = (jnp.arange(B, dtype=jnp.int32)[:, None, None] * S
            + jnp.clip(subw2idx, 0))                                    # [B,NW,MS]
    oh = jax.nn.one_hot(flat, BS, dtype=jnp.float32)                    # [B,NW,MS,BS]
    word_w = (oh * valid[..., None]).sum(axis=2) / cnt                  # [B,NW,BS]

    def sel(pos):
        j = configurations[:, :, pos]                                   # [B,NC]
        jc = jnp.clip(j, 0)
        idx = jnp.broadcast_to(jc[:, :, None], (B, N_CONF, BS))
        rows = jnp.take_along_axis(word_w, idx, axis=1)                 # [B,NC,BS]
        rows = rows * (j >= 0).astype(jnp.float32)[:, :, None]          # EMPTY -> zeros
        g = rows.reshape(N, BS)
        return jnp.pad(g, ((0, N_PAD - N), (0, 0)))

    return jnp.concatenate([sel(0), sel(1)], axis=0)                    # [2*N_PAD, BS]


# --------------------------- full forward ---------------------------
def bertnet_forward(input_ids, attention_mask, configurations, subw2idx, params):
    # BERT word + position embeddings (plain-JAX gather glue)
    x_emb = params["word_emb"][input_ids] + params["pos_emb"][None, :, :]  # [B,S,E]
    x_emb = x_emb * attention_mask[:, :, None]
    x2d = x_emb.reshape(BS, E).astype(jnp.float32)

    # fold cross-batch block mask + key padding into one additive [BS,BS] mask
    bidx = jnp.repeat(jnp.arange(B, dtype=jnp.int32), S)                   # [BS]
    same_batch = bidx[:, None] == bidx[None, :]
    key_valid = attention_mask.reshape(BS) > 0
    am = jnp.where(same_batch & key_valid[None, :], 0.0, -1e9).astype(jnp.float32)

    g_pack = build_gather_matrix(configurations, subw2idx)                 # [2*N_PAD, BS]
    out_pad = bertnet_fused(x2d, am, g_pack, params)                       # [N_PAD, OUT_PAD]
    return out_pad[:N, :OUT]                                               # [B*N_CONF, 4]


# --------------------------- deterministic parameter init ---------------------------
def init_params(key):
    ks = iter(jax.random.split(key, 16))
    s = 0.02

    def rnd(shape):
        return (s * jax.random.normal(next(ks), shape)).astype(jnp.float32)

    # encoder weights
    wq, wk, wv = rnd((E, E)), rnd((E, E)), rnd((E, E))
    w_qkv = jnp.concatenate([wq, wk, wv], axis=1)          # [E, 3E]
    wo = rnd((E, E))
    wf1 = rnd((E, F))
    wf2 = rnd((F, E))
    # MLP head weights
    w1 = rnd((2 * E, H_MLP))
    w2 = jnp.pad(rnd((H_MLP, OUT)), ((0, 0), (0, OUT_PAD - OUT)))

    # pre-cast, lane-packed bf16 weight slabs (no per-call converts)
    w_pack_a = jnp.concatenate([w_qkv, wo, wf1, w2], axis=1).astype(jnp.bfloat16)  # [128, 896]
    w_pack_b = jnp.concatenate([wf2, w1], axis=1).astype(jnp.bfloat16)             # [256, 256]

    # packed f32 bias / LayerNorm vectors, one lane-padded [10, 384] slab
    def row(v):
        v = jnp.asarray(v, jnp.float32).reshape(1, -1)
        return jnp.pad(v, ((0, 0), (0, BIAS_W - v.shape[1])))

    b2 = jnp.full((1, OUT_PAD), -1e30, jnp.float32).at[:, :OUT].set(0.0)  # mask baked in
    bias_pack = jnp.concatenate([
        row(jnp.zeros((3 * E,))),    # b_qkv
        row(jnp.zeros((F,))),        # bf1
        row(jnp.zeros((H_MLP,))),    # b1
        row(b2),                     # b2  (padded classes = -1e30)
        row(jnp.zeros((E,))),        # bo
        row(jnp.ones((E,))),         # ln1 gamma
        row(jnp.zeros((E,))),        # ln1 beta
        row(jnp.zeros((E,))),        # bf2
        row(jnp.ones((E,))),         # ln2 gamma
        row(jnp.zeros((E,))),        # ln2 beta
    ], axis=0)                       # [10, 384]

    return {
        "word_emb": rnd((VOCAB, E)).at[0].set(0.0),        # padding_idx=0
        "pos_emb": rnd((S, E)),
        "w_pack_a": w_pack_a,
        "w_pack_b": w_pack_b,
        "bias_pack": bias_pack,
    }


if __name__ == "__main__":
    key = jax.random.PRNGKey(0)
    kp, kid = jax.random.split(key)
    params = init_params(kp)

    # deterministic synthetic inputs
    input_ids = jax.random.randint(kid, (B, S), 1, VOCAB).astype(jnp.int32)
    input_ids = input_ids.at[1, 6:].set(0)                    # pad tail of sentence 2
    attention_mask = (input_ids != 0).astype(jnp.float32)     # [B,S]

    # parser configurations: [stack_top_word, buffer_front_word], -1 == EMPTY
    configurations = jnp.array([[[1, 2], [0, -1]],
                                [[2, 3], [-1, 1]]], dtype=jnp.int32)      # [B,N_CONF,2]
    # word -> subword positions (padded with -1)
    subw2idx = jnp.array([[[0, -1], [1, 2], [3, -1], [4, 5]],
                          [[0, -1], [1, -1], [2, 3], [4, -1]]], dtype=jnp.int32)

    fwd = jax.jit(bertnet_forward)
    out = fwd(input_ids, attention_mask, configurations, subw2idx, params)
    out = jax.block_until_ready(out)

    assert out.shape == (B * N_CONF, OUT)
    assert bool(jnp.all(jnp.isfinite(out)))
    # head softmax uses exact division -> rows sum to 1 tightly
    assert bool(jnp.allclose(jnp.sum(out, axis=-1), 1.0, atol=1e-3))
    print("KERNEL_OK")
</pallas_src>

<mosaic_0001>
module attributes {stable_mosaic.version = 11 : i64} {
  func.func @bertnet_kernel(%arg0: memref<16x128xf32, #tpu.memory_space<vmem>>, %arg1: memref<16x16xf32, #tpu.memory_space<vmem>>, %arg2: memref<128x896xbf16, #tpu.memory_space<vmem>>, %arg3: memref<256x256xbf16, #tpu.memory_space<vmem>>, %arg4: memref<10x384xf32, #tpu.memory_space<vmem>>, %arg5: memref<16x16xf32, #tpu.memory_space<vmem>>, %arg6: memref<8x128xf32, #tpu.memory_space<vmem>>) attributes {dimension_semantics = [], scalar_prefetch = 0 : i64, scratch_operands = 0 : i64, tpu.core_type = #tpu.core_type<tc>} {
    %c0 = arith.constant 0 : index
    %c0_0 = arith.constant 0 : index
    %0 = vector.load %arg0[%c0, %c0_0] : memref<16x128xf32, #tpu.memory_space<vmem>>, vector<16x128xf32>
    %c0_1 = arith.constant 0 : index
    %c0_2 = arith.constant 0 : index
    %1 = vector.load %arg1[%c0_1, %c0_2] : memref<16x16xf32, #tpu.memory_space<vmem>>, vector<16x16xf32>
    %c0_3 = arith.constant 0 : index
    %c0_4 = arith.constant 0 : index
    %2 = vector.load %arg2[%c0_3, %c0_4] : memref<128x896xbf16, #tpu.memory_space<vmem>>, vector<128x384xbf16>
    %c0_5 = arith.constant 0 : index
    %c384 = arith.constant 384 : index
    %3 = vector.load %arg2[%c0_5, %c384] : memref<128x896xbf16, #tpu.memory_space<vmem>>, vector<128x128xbf16>
    %c0_6 = arith.constant 0 : index
    %c512 = arith.constant 512 : index
    %4 = vector.load %arg2[%c0_6, %c512] : memref<128x896xbf16, #tpu.memory_space<vmem>>, vector<128x256xbf16>
    %c0_7 = arith.constant 0 : index
    %c768 = arith.constant 768 : index
    %5 = vector.load %arg2[%c0_7, %c768] : memref<128x896xbf16, #tpu.memory_space<vmem>>, vector<128x128xbf16>
    %c0_8 = arith.constant 0 : index
    %c0_9 = arith.constant 0 : index
    %6 = vector.load %arg3[%c0_8, %c0_9] : memref<256x256xbf16, #tpu.memory_space<vmem>>, vector<256x128xbf16>
    %c0_10 = arith.constant 0 : index
    %c128 = arith.constant 128 : index
    %7 = vector.load %arg3[%c0_10, %c128] : memref<256x256xbf16, #tpu.memory_space<vmem>>, vector<256x128xbf16>
    %c0_11 = arith.constant 0 : index
    %c0_12 = arith.constant 0 : index
    %8 = vector.load %arg4[%c0_11, %c0_12] : memref<10x384xf32, #tpu.memory_space<vmem>>, vector<1x384xf32>
    %c1 = arith.constant 1 : index
    %c0_13 = arith.constant 0 : index
    %9 = vector.load %arg4[%c1, %c0_13] : memref<10x384xf32, #tpu.memory_space<vmem>>, vector<1x256xf32>
    %c2 = arith.constant 2 : index
    %c0_14 = arith.constant 0 : index
    %10 = vector.load %arg4[%c2, %c0_14] : memref<10x384xf32, #tpu.memory_space<vmem>>, vector<1x128xf32>
    %c3 = arith.constant 3 : index
    %c0_15 = arith.constant 0 : index
    %11 = vector.load %arg4[%c3, %c0_15] : memref<10x384xf32, #tpu.memory_space<vmem>>, vector<1x128xf32>
    %c4 = arith.constant 4 : index
    %c0_16 = arith.constant 0 : index
    %12 = vector.load %arg4[%c4, %c0_16] : memref<10x384xf32, #tpu.memory_space<vmem>>, vector<1x128xf32>
    %c5 = arith.constant 5 : index
    %c0_17 = arith.constant 0 : index
    %13 = vector.load %arg4[%c5, %c0_17] : memref<10x384xf32, #tpu.memory_space<vmem>>, vector<1x128xf32>
    %c6 = arith.constant 6 : index
    %c0_18 = arith.constant 0 : index
    %14 = vector.load %arg4[%c6, %c0_18] : memref<10x384xf32, #tpu.memory_space<vmem>>, vector<1x128xf32>
    %c7 = arith.constant 7 : index
    %c0_19 = arith.constant 0 : index
    %15 = vector.load %arg4[%c7, %c0_19] : memref<10x384xf32, #tpu.memory_space<vmem>>, vector<1x128xf32>
    %c8 = arith.constant 8 : index
    %c0_20 = arith.constant 0 : index
    %16 = vector.load %arg4[%c8, %c0_20] : memref<10x384xf32, #tpu.memory_space<vmem>>, vector<1x128xf32>
    %c9 = arith.constant 9 : index
    %c0_21 = arith.constant 0 : index
    %17 = vector.load %arg4[%c9, %c0_21] : memref<10x384xf32, #tpu.memory_space<vmem>>, vector<1x128xf32>
    %18 = arith.truncf %0 : vector<16x128xf32> to vector<16x128xbf16>
    %cst = arith.constant dense<0.000000e+00> : vector<16x384xf32>
    %19 = tpu.matmul %18, %2, %cst {dimension_numbers = #tpu.dot_dimension_numbers<[1], [0], [0], [1], [0, 0, 1, 1], [], []>} : vector<16x128xbf16>, vector<128x384xbf16>, vector<16x384xf32> -> vector<16x384xf32>
    %20 = vector.broadcast %8 : vector<1x384xf32> to vector<16x384xf32>
    %21 = arith.addf %19, %20 : vector<16x384xf32>
    %22 = vector.extract_strided_slice %21 {offsets = [0, 0], sizes = [16, 128], strides = [1, 1]} : vector<16x384xf32> to vector<16x128xf32>
    %23 = vector.extract_strided_slice %21 {offsets = [0, 128], sizes = [16, 128], strides = [1, 1]} : vector<16x384xf32> to vector<16x128xf32>
    %24 = vector.extract_strided_slice %21 {offsets = [0, 256], sizes = [16, 128], strides = [1, 1]} : vector<16x384xf32> to vector<16x128xf32>
    %25 = arith.truncf %22 : vector<16x128xf32> to vector<16x128xbf16>
    %26 = arith.truncf %23 : vector<16x128xf32> to vector<16x128xbf16>
    "tpu.trace_start"() <{level = 10 : i32, message = "qe,ke->qk"}> : () -> ()
    %cst_22 = arith.constant dense<0.000000e+00> : vector<16x16xf32>
    %27 = tpu.matmul %25, %26, %cst_22 {dimension_numbers = #tpu.dot_dimension_numbers<[1], [1], [0], [0], [0, 0, 1, 0], [], []>} : vector<16x128xbf16>, vector<16x128xbf16>, vector<16x16xf32> -> vector<16x16xf32>
    "tpu.trace_stop"() : () -> ()
    %cst_23 = arith.constant 0.0883883461 : f32
    %28 = vector.broadcast %cst_23 : f32 to vector<16x16xf32>
    %29 = arith.mulf %27, %28 : vector<16x16xf32>
    %30 = arith.addf %29, %1 : vector<16x16xf32>
    %cst_24 = arith.constant dense<0xFF800000> : vector<16xf32>
    %31 = vector.multi_reduction <maximumf>, %30, %cst_24 [1] : vector<16x16xf32> to vector<16xf32>
    %32 = vector.shape_cast %31 : vector<16xf32> to vector<16x1xf32>
    %33 = vector.broadcast %32 : vector<16x1xf32> to vector<16x16xf32>
    %34 = arith.subf %30, %33 : vector<16x16xf32>
    %35 = math.exp %34 : vector<16x16xf32>
    %cst_25 = arith.constant dense<0.000000e+00> : vector<16xf32>
    %36 = vector.multi_reduction <add>, %35, %cst_25 [1] : vector<16x16xf32> to vector<16xf32>
    %37 = vector.shape_cast %36 : vector<16xf32> to vector<16x1xf32>
    %38 = tpu.reciprocal %37 {approx = true} : vector<16x1xf32> -> vector<16x1xf32>
    %39 = vector.broadcast %38 : vector<16x1xf32> to vector<16x16xf32>
    %40 = arith.mulf %35, %39 : vector<16x16xf32>
    %41 = arith.truncf %40 : vector<16x16xf32> to vector<16x16xbf16>
    %42 = arith.truncf %24 : vector<16x128xf32> to vector<16x128xbf16>
    %cst_26 = arith.constant dense<0.000000e+00> : vector<16x128xf32>
    %43 = tpu.matmul %41, %42, %cst_26 {dimension_numbers = #tpu.dot_dimension_numbers<[1], [0], [0], [1], [0, 0, 1, 1], [], []>} : vector<16x16xbf16>, vector<16x128xbf16>, vector<16x128xf32> -> vector<16x128xf32>
    %44 = arith.truncf %43 : vector<16x128xf32> to vector<16x128xbf16>
    %cst_27 = arith.constant dense<0.000000e+00> : vector<16x128xf32>
    %45 = tpu.matmul %44, %3, %cst_27 {dimension_numbers = #tpu.dot_dimension_numbers<[1], [0], [0], [1], [0, 0, 1, 1], [], []>} : vector<16x128xbf16>, vector<128x128xbf16>, vector<16x128xf32> -> vector<16x128xf32>
    %46 = vector.broadcast %12 : vector<1x128xf32> to vector<16x128xf32>
    %47 = arith.addf %45, %46 : vector<16x128xf32>
    %48 = arith.addf %0, %47 : vector<16x128xf32>
    %cst_28 = arith.constant dense<0.000000e+00> : vector<16xf32>
    %49 = vector.multi_reduction <add>, %48, %cst_28 [1] : vector<16x128xf32> to vector<16xf32>
    %50 = vector.shape_cast %49 : vector<16xf32> to vector<16x1xf32>
    %51 = arith.mulf %48, %48 : vector<16x128xf32>
    %cst_29 = arith.constant dense<0.000000e+00> : vector<16xf32>
    %52 = vector.multi_reduction <add>, %51, %cst_29 [1] : vector<16x128xf32> to vector<16xf32>
    %53 = vector.shape_cast %52 : vector<16xf32> to vector<16x1xf32>
    %cst_30 = arith.constant 7.812500e-03 : f32
    %54 = vector.broadcast %cst_30 : f32 to vector<16x1xf32>
    %55 = arith.mulf %50, %54 : vector<16x1xf32>
    %cst_31 = arith.constant 7.812500e-03 : f32
    %56 = vector.broadcast %cst_31 : f32 to vector<16x1xf32>
    %57 = arith.mulf %53, %56 : vector<16x1xf32>
    %58 = arith.mulf %55, %55 : vector<16x1xf32>
    %59 = arith.subf %57, %58 : vector<16x1xf32>
    %60 = vector.broadcast %55 : vector<16x1xf32> to vector<16x128xf32>
    %61 = arith.subf %48, %60 : vector<16x128xf32>
    %cst_32 = arith.constant 9.99999996E-13 : f32
    %62 = vector.broadcast %cst_32 : f32 to vector<16x1xf32>
    %63 = arith.addf %59, %62 : vector<16x1xf32>
    %64 = math.rsqrt %63 : vector<16x1xf32>
    %65 = vector.broadcast %64 : vector<16x1xf32> to vector<16x128xf32>
    %66 = arith.mulf %61, %65 : vector<16x128xf32>
    %67 = vector.broadcast %13 : vector<1x128xf32> to vector<16x128xf32>
    %68 = arith.mulf %66, %67 : vector<16x128xf32>
    %69 = vector.broadcast %14 : vector<1x128xf32> to vector<16x128xf32>
    %70 = arith.addf %68, %69 : vector<16x128xf32>
    %71 = arith.truncf %70 : vector<16x128xf32> to vector<16x128xbf16>
    %cst_33 = arith.constant dense<0.000000e+00> : vector<16x256xf32>
    %72 = tpu.matmul %71, %4, %cst_33 {dimension_numbers = #tpu.dot_dimension_numbers<[1], [0], [0], [1], [0, 0, 1, 1], [], []>} : vector<16x128xbf16>, vector<128x256xbf16>, vector<16x256xf32> -> vector<16x256xf32>
    %73 = vector.broadcast %9 : vector<1x256xf32> to vector<16x256xf32>
    %74 = arith.addf %72, %73 : vector<16x256xf32>
    %cst_34 = arith.constant 5.000000e-01 : f32
    %75 = vector.broadcast %cst_34 : f32 to vector<16x256xf32>
    %76 = arith.mulf %75, %74 : vector<16x256xf32>
    %cst_35 = arith.constant 4.471500e-02 : f32
    %77 = vector.broadcast %cst_35 : f32 to vector<16x256xf32>
    %78 = arith.mulf %77, %74 : vector<16x256xf32>
    %79 = arith.mulf %78, %74 : vector<16x256xf32>
    %80 = arith.mulf %79, %74 : vector<16x256xf32>
    %81 = arith.addf %74, %80 : vector<16x256xf32>
    %cst_36 = arith.constant 0.797884583 : f32
    %82 = vector.broadcast %cst_36 : f32 to vector<16x256xf32>
    %83 = arith.mulf %82, %81 : vector<16x256xf32>
    %84 = math.tanh %83 : vector<16x256xf32>
    %cst_37 = arith.constant 1.000000e+00 : f32
    %85 = vector.broadcast %cst_37 : f32 to vector<16x256xf32>
    %86 = arith.addf %85, %84 : vector<16x256xf32>
    %87 = arith.mulf %76, %86 : vector<16x256xf32>
    %88 = arith.truncf %87 : vector<16x256xf32> to vector<16x256xbf16>
    %cst_38 = arith.constant dense<0.000000e+00> : vector<16x128xf32>
    %89 = tpu.matmul %88, %6, %cst_38 {dimension_numbers = #tpu.dot_dimension_numbers<[1], [0], [0], [1], [0, 0, 1, 1], [], []>} : vector<16x256xbf16>, vector<256x128xbf16>, vector<16x128xf32> -> vector<16x128xf32>
    %90 = vector.broadcast %15 : vector<1x128xf32> to vector<16x128xf32>
    %91 = arith.addf %89, %90 : vector<16x128xf32>
    %92 = arith.addf %70, %91 : vector<16x128xf32>
    %cst_39 = arith.constant dense<0.000000e+00> : vector<16xf32>
    %93 = vector.multi_reduction <add>, %92, %cst_39 [1] : vector<16x128xf32> to vector<16xf32>
    %94 = vector.shape_cast %93 : vector<16xf32> to vector<16x1xf32>
    %95 = arith.mulf %92, %92 : vector<16x128xf32>
    %cst_40 = arith.constant dense<0.000000e+00> : vector<16xf32>
    %96 = vector.multi_reduction <add>, %95, %cst_40 [1] : vector<16x128xf32> to vector<16xf32>
    %97 = vector.shape_cast %96 : vector<16xf32> to vector<16x1xf32>
    %cst_41 = arith.constant 7.812500e-03 : f32
    %98 = vector.broadcast %cst_41 : f32 to vector<16x1xf32>
    %99 = arith.mulf %94, %98 : vector<16x1xf32>
    %cst_42 = arith.constant 7.812500e-03 : f32
    %100 = vector.broadcast %cst_42 : f32 to vector<16x1xf32>
    %101 = arith.mulf %97, %100 : vector<16x1xf32>
    %102 = arith.mulf %99, %99 : vector<16x1xf32>
    %103 = arith.subf %101, %102 : vector<16x1xf32>
    %104 = vector.broadcast %99 : vector<16x1xf32> to vector<16x128xf32>
    %105 = arith.subf %92, %104 : vector<16x128xf32>
    %cst_43 = arith.constant 9.99999996E-13 : f32
    %106 = vector.broadcast %cst_43 : f32 to vector<16x1xf32>
    %107 = arith.addf %103, %106 : vector<16x1xf32>
    %108 = math.rsqrt %107 : vector<16x1xf32>
    %109 = vector.broadcast %108 : vector<16x1xf32> to vector<16x128xf32>
    %110 = arith.mulf %105, %109 : vector<16x128xf32>
    %111 = vector.broadcast %16 : vector<1x128xf32> to vector<16x128xf32>
    %112 = arith.mulf %110, %111 : vector<16x128xf32>
    %113 = vector.broadcast %17 : vector<1x128xf32> to vector<16x128xf32>
    %114 = arith.addf %112, %113 : vector<16x128xf32>
    %c0_44 = arith.constant 0 : index
    %c0_45 = arith.constant 0 : index
    %115 = vector.load %arg5[%c0_44, %c0_45] : memref<16x16xf32, #tpu.memory_space<vmem>>, vector<16x16xf32>
    %116 = arith.truncf %115 : vector<16x16xf32> to vector<16x16xbf16>
    %117 = arith.truncf %114 : vector<16x128xf32> to vector<16x128xbf16>
    %cst_46 = arith.constant dense<0.000000e+00> : vector<16x128xf32>
    %118 = tpu.matmul %116, %117, %cst_46 {dimension_numbers = #tpu.dot_dimension_numbers<[1], [0], [0], [1], [0, 0, 1, 1], [], []>} : vector<16x16xbf16>, vector<16x128xbf16>, vector<16x128xf32> -> vector<16x128xf32>
    %119 = vector.extract_strided_slice %118 {offsets = [0, 0], sizes = [8, 128], strides = [1, 1]} : vector<16x128xf32> to vector<8x128xf32>
    %120 = vector.extract_strided_slice %118 {offsets = [8, 0], sizes = [8, 128], strides = [1, 1]} : vector<16x128xf32> to vector<8x128xf32>
    %121 = tpu.concatenate %119, %120 in 1 : vector<8x128xf32>, vector<8x128xf32> -> vector<8x256xf32>
    %122 = arith.truncf %121 : vector<8x256xf32> to vector<8x256xbf16>
    %cst_47 = arith.constant dense<0.000000e+00> : vector<8x128xf32>
    %123 = tpu.matmul %122, %7, %cst_47 {dimension_numbers = #tpu.dot_dimension_numbers<[1], [0], [0], [1], [0, 0, 1, 1], [], []>} : vector<8x256xbf16>, vector<256x128xbf16>, vector<8x128xf32> -> vector<8x128xf32>
    %124 = vector.broadcast %10 : vector<1x128xf32> to vector<8x128xf32>
    %125 = arith.addf %123, %124 : vector<8x128xf32>
    %126 = math.tanh %125 : vector<8x128xf32>
    %127 = arith.truncf %126 : vector<8x128xf32> to vector<8x128xbf16>
    %cst_48 = arith.constant dense<0.000000e+00> : vector<8x128xf32>
    %128 = tpu.matmul %127, %5, %cst_48 {dimension_numbers = #tpu.dot_dimension_numbers<[1], [0], [0], [1], [0, 0, 1, 1], [], []>} : vector<8x128xbf16>, vector<128x128xbf16>, vector<8x128xf32> -> vector<8x128xf32>
    %129 = vector.broadcast %11 : vector<1x128xf32> to vector<8x128xf32>
    %130 = arith.addf %128, %129 : vector<8x128xf32>
    %cst_49 = arith.constant dense<0xFF800000> : vector<8xf32>
    %131 = vector.multi_reduction <maximumf>, %130, %cst_49 [1] : vector<8x128xf32> to vector<8xf32>
    %132 = vector.shape_cast %131 : vector<8xf32> to vector<8x1xf32>
    %133 = vector.broadcast %132 : vector<8x1xf32> to vector<8x128xf32>
    %134 = arith.subf %130, %133 : vector<8x128xf32>
    %135 = math.exp %134 : vector<8x128xf32>
    %cst_50 = arith.constant dense<0.000000e+00> : vector<8xf32>
    %136 = vector.multi_reduction <add>, %135, %cst_50 [1] : vector<8x128xf32> to vector<8xf32>
    %137 = vector.shape_cast %136 : vector<8xf32> to vector<8x1xf32>
    %138 = vector.broadcast %137 : vector<8x1xf32> to vector<8x128xf32>
    %139 = arith.divf %135, %138 : vector<8x128xf32>
    %c0_51 = arith.constant 0 : index
    %c0_52 = arith.constant 0 : index
    %140 = vector.load %arg6[%c0_51, %c0_52] : memref<8x128xf32, #tpu.memory_space<vmem>>, vector<8x128xf32>
    tpu.vector_store %arg6[%c0_51, %c0_52], %139 {strides = array<i32>} : memref<8x128xf32, #tpu.memory_space<vmem>>, vector<8x128xf32>,
    return
  }
}

</mosaic_0001>

<bundles_post_ra>
// kernel: bertnet_forward.1
= control target key start
LH: loop header
LB: loop body
LE: loop exit
PB: predicated region body
PF: predicated region fallthrough
CT: control target
= control target key end

     0   :  { %v1665_v1 = vmov 0   ;;  %v1666_v2 = vmov 0.0   ;;  %vm1667_vm0 = vmmov 0   ;;  %v185_v29 = vlaneseq  ;;  %s2094_s2 = inlined_call_operand.vmem [shape: bf16[128,896], index: 2, kind: input, shape index: {}]   ;;  %s2095_s0 = inlined_call_operand.vmem [shape: f32[16,128], index: 0, kind: input, shape index: {}]   ;;  %s2096_s4 = inlined_call_operand.vmem [shape: f32[10,384], index: 4, kind: input, shape index: {}]   ;;  %s2097_s1 = inlined_call_operand.vmem [shape: f32[16,16], index: 1, kind: input, shape index: {}]   ;;  %s2098_s3 = inlined_call_operand.vmem [shape: bf16[256,256], index: 3, kind: input, shape index: {}]   ;;  %s2099_s5 = inlined_call_operand.vmem [shape: f32[16,16], index: 5, kind: input, shape index: {}]   ;;  %s2100_s6 = inlined_call_operand.vmem [shape: f32[8,128], index: 6, kind: output, shape index: {}]  }
   0x1   :  { %v1531_v0 = vld [vmem:[%s2094_s2 + $0x4] ss:$28 sps:$4 sm:$0xff]   ;;  %360 = vmatprep.mubr.bf16.mxu0 %v1665_v1  ;;  %1450 = vmatprep.subr.bf16.mxu1 %v1666_v2  ;;  %v1534_v4 = vld [vmem:[%s2094_s2 + $0x3c] ss:$28 sps:$4 sm:$0xff]   ;;  %v1537_v6 = vld [vmem:[%s2094_s2 + $0x74] ss:$28 sps:$4 sm:$0xff]  }
   0x2   :  { %v1533_v3 = vld [vmem:[%s2094_s2] ss:$28 sps:$4 sm:$0xff]   ;;  %328 = vmatprep.subr.bf16.mxu0 %v1531_v0  ;;  %v1536_v5 = vld [vmem:[%s2094_s2 + $0x38] ss:$28 sps:$4 sm:$0xff]   ;;  %v1539_v7 = vld [vmem:[%s2094_s2 + $0x70] ss:$28 sps:$4 sm:$0xff]   ;;  %1466 = vmatprep.mubr.msk.bf16.mxu1 %vm1667_vm0, %v1666_v2 }
   0x3   :  { %329 = vmatpush1.bf16.msra.mxu0 %v1533_v3  ;;  %v1540_v8 = vld [vmem:[%s2094_s2 + $0xac] ss:$28 sps:$4 sm:$0xff]   ;;  %v1543_v10 = vld [vmem:[%s2094_s2 + $0xe4] ss:$28 sps:$4 sm:$0xff]   ;;  %v1546_v14 = vld [vmem:[%s2094_s2 + $0x11c] ss:$28 sps:$4 sm:$0xff]  }
   0x4   :  { %330 = vmatprep.subr.bf16.mxu0 %v1534_v4  ;;  %v1542_v9 = vld [vmem:[%s2094_s2 + $0xa8] ss:$28 sps:$4 sm:$0xff]   ;;  %v1556_v12 = vld [vmem:[%s2094_s2 + $0x40] ss:$28 sps:$4 sm:$0xff]   ;;  %v1557_v15 = vld [vmem:[%s2094_s2 + $0x78] ss:$28 sps:$4 sm:$0xff]  }
   0x5   :  { %v1555_v11 = vld [vmem:[%s2094_s2 + $0x8] ss:$28 sps:$4 sm:$0xff]   ;;  %v1545_v13 = vld [vmem:[%s2094_s2 + $0xe0] ss:$28 sps:$4 sm:$0xff]   ;;  %v1548_v16 = vld [vmem:[%s2094_s2 + $0x118] ss:$28 sps:$4 sm:$0xff]  }
   0x6   :  { %1451 = vmatpush3.bf16.msra.mxu1 %v1555_v11  ;;  %v1549_v17 = vld [vmem:[%s2094_s2 + $0x154] ss:$28 sps:$4 sm:$0xff]   ;;  %v1552_v20 = vld [vmem:[%s2094_s2 + $0x18c] ss:$28 sps:$4 sm:$0xff]   ;;  %v1774_v23 = vld [vmem:[%s2095_s0] sm:$0xff]  ;;  %v1804_v30 = vshrl.u32 %v185_v29, 7 }
   0x7   :  { %331 = vmatpush1.bf16.msra.mxu0 %v1536_v5  ;;  %1452 = vmatprep.subr.bf16.mxu1 %v1666_v2  ;;  %v1558_v18 = vld [vmem:[%s2094_s2 + $0xb0] ss:$28 sps:$4 sm:$0xff]   ;;  %v1559_v21 = vld [vmem:[%s2094_s2 + $0xe8] ss:$28 sps:$4 sm:$0xff]   ;;  %v1560_v25 = vld [vmem:[%s2094_s2 + $0x120] ss:$28 sps:$4 sm:$0xff]  }
   0x8   :  { %332 = vmatprep.subr.bf16.mxu0 %v1537_v6  ;;  %v1551_v19 = vld [vmem:[%s2094_s2 + $0x150] ss:$28 sps:$4 sm:$0xff]   ;;  %v1554_v22 = vld [vmem:[%s2094_s2 + $0x188] ss:$28 sps:$4 sm:$0xff]   ;;  %v1561_v27 = vld [vmem:[%s2094_s2 + $0x158] ss:$28 sps:$4 sm:$0xff]  }
   0x9   :  { %v1779_v24 = vld [vmem:[%s2095_s0 + $0x8] sm:$0xff]  ;;  %v187_v31 = vsub.s32 0, %v1804_v30  ;;  %v191_v33 = vsub.s32 1, %v1804_v30  ;;  %v195_v46 = vsub.s32 2, %v1804_v30  ;;  %v26_v56 = vld [vmem:[%s2097_s1] sm:$0xff]  ;;  %vm459_vm1 = vcmask 130048  }
   0xa   :  { %1453 = vmatpush3.bf16.msra.mxu1 %v1556_v12  ;;  %v183_v26 = vpack.c.bf16 %v1779_v24, %v1774_v23  ;;  %v1562_v28 = vld [vmem:[%s2094_s2 + $0x190] ss:$28 sps:$4 sm:$0xff]  }
   0xb   :  { %333 = vmatpush1.bf16.msra.mxu0 %v1539_v7  ;;  %1454 = vmatprep.subr.bf16.mxu1 %v1666_v2  ;;  %v172_v32 = vld [vmem:[%s2096_s4] ss:$8 sm:$0x7] }
   0xc   :  { %334 = vmatprep.subr.bf16.mxu0 %v1540_v8  ;;  %v188_v34 = vrot.slane %v172_v32, %v187_v31  ;;  %v192_v36 = vrot.slane %v172_v32, %v191_v33  ;;  %v196_v47 = vrot.slane %v172_v32, %v195_v46  ;;  %v27_v60 = vld [vmem:[%s2097_s1 + $0x8] sm:$0xff] }
   0xe   :  { %1455 = vmatpush3.bf16.msra.mxu1 %v1557_v15  ;;  %v1563_v15 = vld [vmem:[%s2094_s2 + $0xc] ss:$28 sps:$4 sm:$0xff]  }
   0xf   :  { %335 = vmatpush1.bf16.msra.mxu0 %v1542_v9  ;;  %1456 = vmatprep.subr.bf16.mxu1 %v1666_v2 }
  0x10   :  { %336 = vmatprep.subr.bf16.mxu0 %v1543_v10 }
  0x12   :  { %1457 = vmatpush3.bf16.msra.mxu1 %v1558_v18  ;;  %v1566_v18 = vld [vmem:[%s2094_s2 + $0xb4] ss:$28 sps:$4 sm:$0xff]  }
  0x13   :  { %337 = vmatpush1.bf16.msra.mxu0 %v1545_v13  ;;  %1458 = vmatprep.subr.bf16.mxu1 %v1666_v2 }
  0x14   :  { %338 = vmatprep.subr.bf16.mxu0 %v1546_v14 }
  0x16   :  { %1459 = vmatpush3.bf16.msra.mxu1 %v1559_v21  ;;  %v1569_v21 = vld [vmem:[%s2094_s2 + $0x15c] ss:$28 sps:$4 sm:$0xff]  }
  0x17   :  { %339 = vmatpush1.bf16.msra.mxu0 %v1548_v16  ;;  %1460 = vmatprep.subr.bf16.mxu1 %v1666_v2  ;;  %v1564_v16 = vld [vmem:[%s2094_s2 + $0x44] ss:$28 sps:$4 sm:$0xff]  }
  0x18   :  { %340 = vmatprep.subr.bf16.mxu0 %v1549_v17  ;;  %v1565_v17 = vld [vmem:[%s2094_s2 + $0x7c] ss:$28 sps:$4 sm:$0xff]  }
  0x1a   :  { %1461 = vmatpush3.bf16.msra.mxu1 %v1560_v25 }
  0x1b   :  { %341 = vmatpush1.bf16.msra.mxu0 %v1551_v19  ;;  %1462 = vmatprep.subr.bf16.mxu1 %v1666_v2  ;;  %v1567_v19 = vld [vmem:[%s2094_s2 + $0xec] ss:$28 sps:$4 sm:$0xff]  }
  0x1c   :  { %342 = vmatprep.subr.bf16.mxu0 %v1552_v20  ;;  %v1568_v20 = vld [vmem:[%s2094_s2 + $0x124] ss:$28 sps:$4 sm:$0xff]  }
  0x1e   :  { %1463 = vmatpush3.bf16.msra.mxu1 %v1561_v27 }
  0x1f   :  { %343 = vmatpush1.bf16.msra.mxu0 %v1554_v22  ;;  %1464 = vmatprep.subr.bf16.mxu1 %v1666_v2 }
  0x20   :  { %1482 = vmatprep.subr.bf16.mxu0 %v1666_v2 }
  0x22   :  { %361 = vmatmul.mubr.bf16.vlgmr.msra.gmra.mrb[0].mxu0 %v183_v26  ;;  %1465 = vmatpush3.bf16.msra.mxu1 %v1562_v28 }
  0x23   :  { %1470 = vmatprep.subr.bf16.mxu1 %v1666_v2  ;;  %1498 = vmatprep.mubr.msk.bf16.mxu0 %vm1667_vm0, %v1666_v2 }
  0x24   :  { %1483 = vmatpush3.bf16.msra.mxu0 %v1563_v15 }
  0x25   :  { %1467 = vmatmul.mubr.bf16.vlgmr.msra.gmra.mrb[0].mxu1 %v183_v26  ;;  %1484 = vmatprep.subr.bf16.mxu0 %v1666_v2 }
  0x26   :  { %1472 = vmatprep.mubr.msk.bf16.mxu1 %vm1667_vm0, %v1666_v2 }
  0x28   :  { %1485 = vmatpush3.bf16.msra.mxu0 %v1564_v16 }
  0x29   :  { %1486 = vmatprep.subr.bf16.mxu0 %v1666_v2 }
  0x2c   :  { %1487 = vmatpush3.bf16.msra.mxu0 %v1565_v17 }
  0x2d   :  { %1488 = vmatprep.subr.bf16.mxu0 %v1666_v2 }
  0x30   :  { %1489 = vmatpush3.bf16.msra.mxu0 %v1566_v18  ;;  %v178_v18 = vld [vmem:[%s2096_s4 + $0x5] ss:$0 sm:$0xff] }
  0x31   :  { %1490 = vmatprep.subr.bf16.mxu0 %v1666_v2 }
  0x34   :  { %1491 = vmatpush3.bf16.msra.mxu0 %v1567_v19 }
  0x35   :  { %1492 = vmatprep.subr.bf16.mxu0 %v1666_v2 }
  0x38   :  { %1493 = vmatpush3.bf16.msra.mxu0 %v1568_v20 }
  0x39   :  { %1494 = vmatprep.subr.bf16.mxu0 %v1666_v2 }
  0x3c   :  { %1495 = vmatpush3.bf16.msra.mxu0 %v1569_v21 }
  0x3d   :  { %1496 = vmatprep.subr.bf16.mxu0 %v1666_v2 }
  0xf5   :  { %v362_v35 = vpop.f32.mrb[0].mxu0 }
  0xf6   :  { %v364_v37 = vpop.f32.mrb[1].mxu0  ;;  %v363_v39 = vadd.f32 %v362_v35, %v188_v34 }
  0xf7   :  { %v366_v38 = vpop.f32.mrb[2].mxu0  ;;  %v365_v42 = vadd.f32 %v364_v37, %v192_v36 }
  0xf8   :  { %v367_v40 = vadd.f32 %v366_v38, %v188_v34  ;;  %v368_v41 = vpop.f32.mrb[3].mxu0  ;;  %v405_v48 = vpop.f32.mrb[0].mxu1  ;;  %v1570_v34 = vld [vmem:[%s2094_s2 + $0x194] ss:$28 sps:$4 sm:$0xff]  }
  0xf9   :  { %v369_v43 = vadd.f32 %v368_v41, %v192_v36  ;;  %v406_v49 = vadd.f32 %v405_v48, %v196_v47  ;;  %v1468_v50 = vpop.f32.mrb[1].mxu1  ;;  %1497 = vmatpush3.bf16.msra.mxu0 %v1570_v34  ;;  %v1573_v41 = vld [vmem:[%s2094_s2 + $0x14] ss:$28 sps:$4 sm:$0xff]   ;;  %v1595_v34 = vld [vmem:[%s2098_s3 + $0x80] ss:$8 sps:$4 sm:$0xff]  }
  0xfa   :  { %v412_v44 = vpack.c.bf16 %v367_v40, %v363_v39  ;;  %v408_v51 = vpop.f32.mrb[2].mxu1  ;;  %v1571_v40 = vld [vmem:[%s2094_s2 + $0x10] ss:$28 sps:$4 sm:$0xff]   ;;  %1395 = vmatprep.subr.bf16.mxu0 %v1595_v34 }
  0xfb   :  { %v413_v45 = vpack.c.bf16 %v369_v43, %v365_v42  ;;  %v409_v52 = vadd.f32 %v408_v51, %v196_v47  ;;  %v1469_v53 = vpop.f32.mrb[3].mxu1 }
  0xfc   :  { %v1574_v53 = vld [vmem:[%s2094_s2 + $0x48] ss:$28 sps:$4 sm:$0xff]  }
  0xfd   :  { %1471 = vmatpush3.bf16.xpose.msra.mxu1 %v413_v45  ;;  %v483_v54 = vpack.c.bf16 %v409_v52, %v406_v49  ;;  %v1576_v52 = vld [vmem:[%s2094_s2 + $0x4c] ss:$28 sps:$4 sm:$0xff]  }
  0xfe   :  { %1476 = vmatprep.subr.bf16.mxu1 %v1666_v2 }
 0x104   :  { %1473 = vmatmul.mubr.bf16.vlgmr.msra.gmra.mrb[4].mxu1 %v412_v44 }
 0x105   :  { %1478 = vmatprep.mubr.msk.bf16.mxu1 %vm1667_vm0, %v1666_v2  ;;  %1477 = vmatpush3.bf16.msra.mxu1 %v483_v54  ;;  %v1582_v54 = vld [vmem:[%s2094_s2 + $0xbc] ss:$28 sps:$4 sm:$0xff]  }
 0x106   :  { %742 = vmatprep.subr.bf16.mxu1 %v1573_v41  ;;  %v1602_v41 = vld [vmem:[%s2098_s3 + $0x30] ss:$8 sps:$4 sm:$0xff]  }
 0x1d7   :  { %v448_v55 = vpop.f32.mrb[4].mxu1 }
 0x1d8   :  { %v455_v57 = vmul.f32 0.088388346, %v448_v55  ;;  %v1474_v58 = vpop.f32.mrb[5].mxu1  ;;  %v1580_v55 = vld [vmem:[%s2094_s2 + $0xb8] ss:$28 sps:$4 sm:$0xff]  }
 0x1d9   :  { %v451_v59 = vpop.f32.mrb[6].mxu1  ;;  %v1588_v58 = vld [vmem:[%s2094_s2 + $0x12c] ss:$28 sps:$4 sm:$0xff]  }
 0x1da   :  { %v456_v61 = vmul.f32 0.088388346, %v451_v59  ;;  %v1475_v62 = vpop.f32.mrb[7].mxu1  ;;  %v457_v63 = vadd.f32 %v455_v57, %v26_v56  ;;  %v1583_v56 = vld [vmem:[%s2094_s2 + $0xf0] ss:$28 sps:$4 sm:$0xff]  }
 0x1db   :  { %v1585_v57 = vld [vmem:[%s2094_s2 + $0xf4] ss:$28 sps:$4 sm:$0xff]   ;;  %v1586_v59 = vld [vmem:[%s2094_s2 + $0x128] ss:$28 sps:$4 sm:$0xff]   ;;  %v1594_v62 = vld [vmem:[%s2094_s2 + $0x19c] ss:$28 sps:$4 sm:$0xff]  }
 0x1dc   :  { %v460_v0 = vsel %vm459_vm1, %v457_v63, -inf  ;;  %v458_v3 = vadd.f32 %v456_v61, %v27_v60  ;;  %v1591_v60 = vld [vmem:[%s2094_s2 + $0x164] ss:$28 sps:$4 sm:$0xff]  }
 0x1dd   :  { %461 = vmax.xlane.f32.xlu0 %v460_v0  ;;  %v1589_v61 = vld [vmem:[%s2094_s2 + $0x160] ss:$28 sps:$4 sm:$0xff]  }
 0x1de   :  { %v463_v4 = vsel %vm459_vm1, %v458_v3, -inf }
 0x1e1   :  { %464 = vmax.xlane.f32.xlu0 %v463_v4 }
 0x26a   :  { %v462_v5 = vpop.xlane.xlu0 %461 }
 0x26b   :  { %v466_v6 = vsub.f32 %v457_v63, %v462_v5  ;;  %v1592_v63 = vld [vmem:[%s2094_s2 + $0x198] ss:$28 sps:$4 sm:$0xff]  }
 0x26d   :  { %v468_v7 = vmul.f32 1.442695, %v466_v6 }
 0x26e   :  { %v465_v8 = vpop.xlane.xlu0 %464 }
 0x26f   :  { %1635 = vpow2.f32 %v468_v7  ;;  %v467_v9 = vsub.f32 %v458_v3, %v465_v8 }
 0x271   :  { %v470_v10 = vmul.f32 1.442695, %v467_v9 }
 0x273   :  { %1637 = vpow2.f32 %v470_v10 }
 0x279   :  { %v1636_v11 = vpop.eup %1635 }
 0x27a   :  { %v472_v12 = vsel %vm459_vm1, %v1636_v11, 0.0 }
 0x27b   :  { %473 = vadd.xlane.f32.xlu1 %v472_v12 }
 0x27d   :  { %v1638_v13 = vpop.eup %1637 }
 0x27e   :  { %v475_v14 = vsel %vm459_vm1, %v1638_v13, 0.0 }
 0x27f   :  { %476 = vadd.xlane.f32.xlu1 %v475_v14 }
 0x308   :  { %v474_v22 = vpop.xlane.xlu1 %473 }
 0x309   :  { %1639 = vrcp.f32 %v474_v22 }
 0x30c   :  { %v477_v25 = vpop.xlane.xlu1 %476 }
 0x30d   :  { %1641 = vrcp.f32 %v477_v25 }
 0x313   :  { %v1640_v26 = vpop.eup %1639 }
 0x314   :  { %v480_v28 = vmul.f32 %v1640_v26, %v1636_v11  ;;  %v179_v26 = vld [vmem:[%s2096_s4 + $0x6] ss:$0 sm:$0xff] }
 0x317   :  { %v1642_v27 = vpop.eup %1641 }
 0x318   :  { %v481_v29 = vmul.f32 %v1642_v27, %v1638_v13 }
 0x31a   :  { %v482_v32 = vpack.c.bf16 %v481_v29, %v480_v28 }
 0x31c   :  { %1479 = vmatmul.mubr.msk.bf16.vlgmr.msra.gmra.mrb[8].mxu1 %vm459_vm1, %v482_v32 }
 0x31d   :  { %774 = vmatprep.mubr.bf16.mxu1 %v1665_v1  ;;  %743 = vmatpush1.bf16.msra.mxu1 %v1571_v40  ;;  %v177_v1 = vld [vmem:[%s2096_s4 + $0x4] ss:$0 sm:$0xff]  ;;  %v1601_v40 = vld [vmem:[%s2098_s3 + $0xb0] ss:$8 sps:$4 sm:$0xff]  }
 0x31e   :  { %744 = vmatprep.subr.bf16.mxu1 %v1576_v52 }
 0x321   :  { %745 = vmatpush1.bf16.msra.mxu1 %v1574_v53 }
 0x3ef   :  { %v521_v35 = vpop.f32.mrb[8].mxu1 }
 0x3f0   :  { %v1480_v36 = vpop.f32.mrb[9].mxu1 }
 0x3f1   :  { %v524_v37 = vpop.f32.mrb[10].mxu1  ;;  %v1597_v36 = vld [vmem:[%s2098_s3 + $0x90] ss:$8 sps:$4 sm:$0xff]  }
 0x3f2   :  { %v528_v38 = vpack.c.bf16 %v524_v37, %v521_v35  ;;  %v1481_v39 = vpop.f32.mrb[11].mxu1  ;;  %v1596_v35 = vld [vmem:[%s2098_s3] ss:$8 sps:$4 sm:$0xff]   ;;  %v1598_v37 = vld [vmem:[%s2098_s3 + $0x10] ss:$8 sps:$4 sm:$0xff]  }
 0x3f3   :  { %v1600_v39 = vld [vmem:[%s2098_s3 + $0x20] ss:$8 sps:$4 sm:$0xff]  }
 0x3f4   :  { %1499 = vmatmul.mubr.bf16.vlgmr.msra.gmra.mrb[4].mxu0 %v528_v38  ;;  %v1599_v38 = vld [vmem:[%s2098_s3 + $0xa0] ss:$8 sps:$4 sm:$0xff]  }
 0x3f5   :  { %1396 = vmatpush3.bf16.msra.mxu0 %v1596_v35 }
 0x3f6   :  { %1397 = vmatprep.subr.bf16.mxu0 %v1597_v36 }
 0x3f9   :  { %1398 = vmatpush3.bf16.msra.mxu0 %v1598_v37 }
 0x3fa   :  { %1399 = vmatprep.subr.bf16.mxu0 %v1599_v38 }
 0x3fd   :  { %1400 = vmatpush3.bf16.msra.mxu0 %v1600_v39  ;;  %v180_v39 = vld [vmem:[%s2096_s4 + $0x7] ss:$0 sm:$0xff] }
 0x3fe   :  { %1401 = vmatprep.subr.bf16.mxu0 %v1601_v40 }
 0x401   :  { %1402 = vmatpush3.bf16.msra.mxu0 %v1602_v41 }
 0x4c7   :  { %v611_v42 = vpop.f32.mrb[4].mxu0 }
 0x4c8   :  { %v612_v43 = vadd.f32 %v611_v42, %v177_v1  ;;  %v1500_v44 = vpop.f32.mrb[5].mxu0  ;;  %v1604_v42 = vld [vmem:[%s2098_s3 + $0x40] ss:$8 sps:$4 sm:$0xff]  }
 0x4c9   :  { %v614_v45 = vpop.f32.mrb[6].mxu0  ;;  %v1606_v44 = vld [vmem:[%s2098_s3 + $0x50] ss:$8 sps:$4 sm:$0xff]  }
 0x4ca   :  { %v618_v46 = vadd.f32 %v612_v43, %v1774_v23  ;;  %v615_v47 = vadd.f32 %v614_v45, %v177_v1  ;;  %v1501_v48 = vpop.f32.mrb[7].mxu0  ;;  %v1579_v23 = vld [vmem:[%s2094_s2 + $0x84] ss:$28 sps:$4 sm:$0xff]   ;;  %v1605_v43 = vld [vmem:[%s2098_s3 + $0xd0] ss:$8 sps:$4 sm:$0xff]  }
 0x4cb   :  { %746 = vmatprep.subr.bf16.mxu1 %v1579_v23  ;;  %v1603_v1 = vld [vmem:[%s2098_s3 + $0xc0] ss:$8 sps:$4 sm:$0xff]   ;;  %v1610_v48 = vld [vmem:[%s2098_s3 + $0x70] ss:$8 sps:$4 sm:$0xff]  }
 0x4cc   :  { %v619_v49 = vadd.f32 %v615_v47, %v1779_v24  ;;  %620 = vadd.xlane.f32.xlu0 %v618_v46  ;;  %v624_v50 = vmul.f32 %v618_v46, %v618_v46  ;;  %v1577_v24 = vld [vmem:[%s2094_s2 + $0x80] ss:$28 sps:$4 sm:$0xff]   ;;  %1403 = vmatprep.subr.bf16.mxu0 %v1603_v1  ;;  %v1609_v47 = vld [vmem:[%s2098_s3 + $0xf0] ss:$8 sps:$4 sm:$0xff]  }
 0x4cd   :  { %747 = vmatpush1.bf16.msra.mxu1 %v1577_v24  ;;  %v1607_v45 = vld [vmem:[%s2098_s3 + $0xe0] ss:$8 sps:$4 sm:$0xff]   ;;  %1404 = vmatpush3.bf16.msra.mxu0 %v1604_v42 }
 0x4ce   :  { %622 = vadd.xlane.f32.xlu1 %v619_v49  ;;  %v625_v51 = vmul.f32 %v619_v49, %v619_v49  ;;  %748 = vmatprep.subr.bf16.mxu1 %v1582_v54 }
 0x4cf   :  { %1405 = vmatprep.subr.bf16.mxu0 %v1605_v43 }
 0x4d0   :  { %626 = vadd.xlane.f32.xlu0 %v624_v50 }
 0x4d1   :  { %749 = vmatpush1.bf16.msra.mxu1 %v1580_v55  ;;  %1406 = vmatpush3.bf16.msra.mxu0 %v1606_v44 }
 0x4d2   :  { %628 = vadd.xlane.f32.xlu1 %v625_v51  ;;  %750 = vmatprep.subr.bf16.mxu1 %v1585_v57 }
 0x4d3   :  { %1407 = vmatprep.subr.bf16.mxu0 %v1607_v45 }
 0x4d5   :  { %751 = vmatpush1.bf16.msra.mxu1 %v1583_v56 }
 0x4d6   :  { %752 = vmatprep.subr.bf16.mxu1 %v1588_v58 }
 0x4d9   :  { %753 = vmatpush1.bf16.msra.mxu1 %v1586_v59 }
 0x4da   :  { %754 = vmatprep.subr.bf16.mxu1 %v1591_v60 }
 0x4dd   :  { %755 = vmatpush1.bf16.msra.mxu1 %v1589_v61 }
 0x4de   :  { %756 = vmatprep.subr.bf16.mxu1 %v1594_v62 }
 0x4e1   :  { %757 = vmatpush1.bf16.msra.mxu1 %v1592_v63 }
 0x4e2   :  { %1502 = vmatprep.subr.bf16.mxu1 %v1666_v2 }
 0x559   :  { %v621_v0 = vpop.xlane.xlu0 %620 }
 0x55a   :  { %v630_v3 = vmul.f32 0.0078125, %v621_v0 }
 0x55b   :  { %v623_v4 = vpop.xlane.xlu1 %622 }
 0x55c   :  { %v631_v5 = vmul.f32 0.0078125, %v623_v4  ;;  %v634_v7 = vmul.f32 %v630_v3, %v630_v3  ;;  %v638_v16 = vsub.f32 %v618_v46, %v630_v3  ;;  %v1608_v46 = vld [vmem:[%s2098_s3 + $0x60] ss:$8 sps:$4 sm:$0xff]  }
 0x55d   :  { %v627_v6 = vpop.xlane.xlu0 %626  ;;  %1408 = vmatpush3.bf16.msra.mxu0 %v1608_v46 }
 0x55e   :  { %v632_v8 = vmul.f32 0.0078125, %v627_v6  ;;  %v635_v10 = vmul.f32 %v631_v5, %v631_v5  ;;  %v639_v19 = vsub.f32 %v619_v49, %v631_v5  ;;  %1409 = vmatprep.subr.bf16.mxu0 %v1609_v47  ;;  %v1282_v49 = vld [vmem:[%s2096_s4 + $0x1] ss:$8 sm:$0x3] }
 0x55f   :  { %v629_v9 = vpop.xlane.xlu1 %628  ;;  %v655_v50 = vrot.slane %v1282_v49, %v187_v31  ;;  %v659_v51 = vrot.slane %v1282_v49, %v191_v33 }
 0x560   :  { %v636_v11 = vsub.f32 %v632_v8, %v634_v7  ;;  %v633_v12 = vmul.f32 0.0078125, %v629_v9 }
 0x561   :  { %1410 = vmatpush3.bf16.msra.mxu0 %v1610_v48 }
 0x562   :  { %v640_v13 = vadd.f32 1e-12, %v636_v11  ;;  %v637_v14 = vsub.f32 %v633_v12, %v635_v10  ;;  %1508 = vmatprep.subr.bf16.mxu0 %v1666_v2 }
 0x564   :  { %1643 = vrsqrt.f32 %v640_v13  ;;  %v641_v15 = vadd.f32 1e-12, %v637_v14 }
 0x566   :  { %1645 = vrsqrt.f32 %v641_v15 }
 0x56e   :  { %v1644_v17 = vpop.eup %1643 }
 0x56f   :  { %v644_v20 = vmul.f32 %v1644_v17, %v638_v16 }
 0x570   :  { %v1646_v21 = vpop.eup %1645 }
 0x571   :  { %v645_v22 = vmul.f32 %v1646_v21, %v639_v19  ;;  %v646_v25 = vmul.f32 %v644_v20, %v178_v18 }
 0x573   :  { %v647_v27 = vmul.f32 %v645_v22, %v178_v18  ;;  %v1922_v28 = vadd.f32 %v646_v25, %v179_v26 }
 0x575   :  { %v1924_v29 = vadd.f32 %v647_v27, %v179_v26 }
 0x577   :  { %v650_v32 = vpack.c.bf16 %v1924_v29, %v1922_v28 }
 0x579   :  { %775 = vmatmul.mubr.bf16.vlgmr.msra.gmra.mrb[12].mxu1 %v650_v32 }
 0x57a   :  { %1504 = vmatprep.mubr.msk.bf16.mxu1 %vm1667_vm0, %v1666_v2 }
 0x64c   :  { %v776_v52 = vpop.f32.mrb[12].mxu1 }
 0x64d   :  { %v777_v53 = vadd.f32 %v776_v52, %v655_v50  ;;  %v778_v23 = vpop.f32.mrb[13].mxu1 }
 0x64e   :  { %v779_v24 = vadd.f32 %v778_v23, %v659_v51  ;;  %v780_v54 = vpop.f32.mrb[14].mxu1 }
 0x64f   :  { %v789_v55 = vmul.f32 0.044715, %v777_v53  ;;  %v781_v56 = vadd.f32 %v780_v54, %v655_v50  ;;  %v782_v57 = vpop.f32.mrb[15].mxu1  ;;  %v785_v19 = vmul.f32 0.5, %v777_v53 }
 0x650   :  { %v790_v58 = vmul.f32 0.044715, %v779_v24  ;;  %v783_v59 = vadd.f32 %v782_v57, %v659_v51  ;;  %v786_v22 = vmul.f32 0.5, %v779_v24 }
 0x651   :  { %v793_v60 = vmul.f32 %v789_v55, %v777_v53  ;;  %v791_v61 = vmul.f32 0.044715, %v781_v56  ;;  %v787_v20 = vmul.f32 0.5, %v781_v56 }
 0x652   :  { %v794_v62 = vmul.f32 %v790_v58, %v779_v24  ;;  %v792_v63 = vmul.f32 0.044715, %v783_v59  ;;  %v788_v25 = vmul.f32 0.5, %v783_v59 }
 0x653   :  { %v797_v0 = vmul.f32 %v793_v60, %v777_v53  ;;  %v795_v3 = vmul.f32 %v791_v61, %v781_v56 }
 0x654   :  { %v798_v31 = vmul.f32 %v794_v62, %v779_v24  ;;  %v796_v4 = vmul.f32 %v792_v63, %v783_v59  ;;  %v181_v62 = vld [vmem:[%s2096_s4 + $0x18] ss:$0 sm:$0xff] }
 0x655   :  { %v801_v30 = vadd.f32 %v797_v0, %v777_v53  ;;  %v799_v33 = vmul.f32 %v795_v3, %v781_v56 }
 0x656   :  { %v800_v5 = vmul.f32 %v796_v4, %v783_v59  ;;  %v802_v6 = vadd.f32 %v798_v31, %v779_v24 }
 0x657   :  { %v805_v7 = vmul.f32 0.7978846, %v801_v30  ;;  %v803_v8 = vadd.f32 %v799_v33, %v781_v56  ;;  %v182_v30 = vld [vmem:[%s2096_s4 + $0x19] ss:$0 sm:$0xff] }
 0x658   :  { %v804_v9 = vadd.f32 %v800_v5, %v783_v59  ;;  %v806_v10 = vmul.f32 0.7978846, %v802_v6 }
 0x659   :  { %1647 = vtanh.f32 %v805_v7  ;;  %v807_v11 = vmul.f32 0.7978846, %v803_v8  ;;  %v992_v7 = vld [vmem:[%s2099_s5] sm:$0xff]  ;;  %v993_v8 = vld [vmem:[%s2099_s5 + $0x8] sm:$0xff] }
 0x65a   :  { %v808_v12 = vmul.f32 0.7978846, %v804_v9  ;;  %1649 = vtanh.f32 %v806_v10  ;;  %v1611_v9 = vld [vmem:[%s2098_s3 + $0x84] ss:$8 sps:$4 sm:$0xff]  }
 0x65b   :  { %1651 = vtanh.f32 %v807_v11  ;;  %v994_v11 = vpack.c.bf16 %v993_v8, %v992_v7 }
 0x65c   :  { %1653 = vtanh.f32 %v808_v12  ;;  %v1612_v12 = vld [vmem:[%s2098_s3 + $0x4] ss:$8 sps:$4 sm:$0xff]  }
 0x663   :  { %v1648_v13 = vpop.eup %1647 }
 0x664   :  { %v1650_v14 = vpop.eup %1649  ;;  %v813_v15 = vadd.f32 1.0, %v1648_v13  ;;  %v1613_v13 = vld [vmem:[%s2098_s3 + $0x94] ss:$8 sps:$4 sm:$0xff]  }
 0x665   :  { %v1652_v16 = vpop.eup %1651  ;;  %v814_v17 = vadd.f32 1.0, %v1650_v14  ;;  %v1614_v14 = vld [vmem:[%s2098_s3 + $0x14] ss:$8 sps:$4 sm:$0xff]  }
 0x666   :  { %v1654_v18 = vpop.eup %1653  ;;  %v815_v21 = vadd.f32 1.0, %v1652_v16  ;;  %v817_v27 = vmul.f32 %v813_v15, %v785_v19  ;;  %v1615_v15 = vld [vmem:[%s2098_s3 + $0xa4] ss:$8 sps:$4 sm:$0xff]  }
 0x667   :  { %v816_v26 = vadd.f32 1.0, %v1654_v18  ;;  %v818_v34 = vmul.f32 %v814_v17, %v786_v22  ;;  %v1616_v16 = vld [vmem:[%s2098_s3 + $0x24] ss:$8 sps:$4 sm:$0xff]   ;;  %v1617_v17 = vld [vmem:[%s2098_s3 + $0xb4] ss:$8 sps:$4 sm:$0xff]  }
 0x668   :  { %v819_v32 = vmul.f32 %v815_v21, %v787_v20  ;;  %v1618_v18 = vld [vmem:[%s2098_s3 + $0x34] ss:$8 sps:$4 sm:$0xff]   ;;  %v1619_v19 = vld [vmem:[%s2098_s3 + $0xc4] ss:$8 sps:$4 sm:$0xff]  }
 0x669   :  { %v820_v35 = vmul.f32 %v816_v26, %v788_v25  ;;  %v1620_v20 = vld [vmem:[%s2098_s3 + $0x44] ss:$8 sps:$4 sm:$0xff]   ;;  %v1621_v21 = vld [vmem:[%s2098_s3 + $0xd4] ss:$8 sps:$4 sm:$0xff]  }
 0x66a   :  { %v821_v36 = vpack.c.bf16 %v819_v32, %v817_v27  ;;  %v1622_v22 = vld [vmem:[%s2098_s3 + $0x54] ss:$8 sps:$4 sm:$0xff]   ;;  %v1623_v25 = vld [vmem:[%s2098_s3 + $0xe4] ss:$8 sps:$4 sm:$0xff]  }
 0x66b   :  { %v822_v37 = vpack.c.bf16 %v820_v35, %v818_v34  ;;  %v1624_v26 = vld [vmem:[%s2098_s3 + $0x64] ss:$8 sps:$4 sm:$0xff]   ;;  %v1625_v27 = vld [vmem:[%s2098_s3 + $0xf4] ss:$8 sps:$4 sm:$0xff]  }
 0x66c   :  { %v1626_v32 = vld [vmem:[%s2098_s3 + $0x74] ss:$8 sps:$4 sm:$0xff]   ;;  %v1628_v35 = vld [vmem:[%s2094_s2 + $0x50] ss:$28 sps:$4 sm:$0xff]  }
 0x66d   :  { %951 = vmatprep.mubr.bf16.mxu0 %v822_v37  ;;  %v1627_v34 = vld [vmem:[%s2094_s2 + $0x18] ss:$28 sps:$4 sm:$0xff]  }
 0x66e   :  { %952 = vmatmul.mubr.bf16.vlgmr.msra.gmra.mrb[8].mxu0 %v821_v36  ;;  %v1629_v36 = vld [vmem:[%s2094_s2 + $0x88] ss:$28 sps:$4 sm:$0xff]  }
 0x66f   :  { %1524 = vmatprep.mubr.msk.bf16.mxu0 %vm1667_vm0, %v1666_v2  ;;  %1509 = vmatpush3.bf16.msra.mxu0 %v1627_v34 }
 0x670   :  { %1510 = vmatprep.subr.bf16.mxu0 %v1666_v2 }
 0x673   :  { %1511 = vmatpush3.bf16.msra.mxu0 %v1628_v35 }
 0x674   :  { %1512 = vmatprep.subr.bf16.mxu0 %v1666_v2 }
 0x677   :  { %1513 = vmatpush3.bf16.msra.mxu0 %v1629_v36 }
 0x678   :  { %1514 = vmatprep.subr.bf16.mxu0 %v1666_v2 }
 0x741   :  { %v1411_v38 = vpop.f32.mrb[8].mxu0 }
 0x742   :  { %v1412_v40 = vpop.f32.mrb[9].mxu0 }
 0x743   :  { %v1413_v41 = vadd.f32 %v1412_v40, %v1411_v38  ;;  %v1414_v1 = vpop.f32.mrb[10].mxu0 }
 0x744   :  { %v1415_v42 = vpop.f32.mrb[11].mxu0 }
 0x745   :  { %v954_v43 = vadd.f32 %v1413_v41, %v180_v39  ;;  %v1416_v44 = vadd.f32 %v1415_v42, %v1414_v1  ;;  %v1630_v42 = vld [vmem:[%s2094_s2 + $0xc0] ss:$28 sps:$4 sm:$0xff]  }
 0x746   :  { %1515 = vmatpush3.bf16.msra.mxu0 %v1630_v42 }
 0x747   :  { %v957_v45 = vadd.f32 %v1416_v44, %v180_v39  ;;  %v960_v46 = vadd.f32 %v954_v43, %v1922_v28  ;;  %1516 = vmatprep.subr.bf16.mxu0 %v1666_v2  ;;  %v1631_v43 = vld [vmem:[%s2094_s2 + $0xf8] ss:$28 sps:$4 sm:$0xff]   ;;  %v1632_v44 = vld [vmem:[%s2094_s2 + $0x130] ss:$28 sps:$4 sm:$0xff]  }
 0x749   :  { %962 = vadd.xlane.f32.xlu0 %v960_v46  ;;  %v961_v47 = vadd.f32 %v957_v45, %v1924_v29  ;;  %v966_v48 = vmul.f32 %v960_v46, %v960_v46  ;;  %v1633_v45 = vld [vmem:[%s2094_s2 + $0x168] ss:$28 sps:$4 sm:$0xff]  }
 0x74a   :  { %1517 = vmatpush3.bf16.msra.mxu0 %v1631_v43 }
 0x74b   :  { %964 = vadd.xlane.f32.xlu1 %v961_v47  ;;  %v967_v49 = vmul.f32 %v961_v47, %v961_v47  ;;  %1518 = vmatprep.subr.bf16.mxu0 %v1666_v2 }
 0x74d   :  { %968 = vadd.xlane.f32.xlu0 %v966_v48  ;;  %v175_v48 = vld [vmem:[%s2096_s4 + $0x2] ss:$0 sm:$0xff] }
 0x74e   :  { %1519 = vmatpush3.bf16.msra.mxu0 %v1632_v44 }
 0x74f   :  { %970 = vadd.xlane.f32.xlu1 %v967_v49  ;;  %1520 = vmatprep.subr.bf16.mxu0 %v1666_v2 }
 0x752   :  { %1521 = vmatpush3.bf16.msra.mxu0 %v1633_v45 }
 0x753   :  { %1522 = vmatprep.subr.bf16.mxu0 %v1666_v2  ;;  %v176_v2 = vld [vmem:[%s2096_s4 + $0x3] ss:$0 sm:$0xff] }
 0x7d6   :  { %v963_v50 = vpop.xlane.xlu0 %962 }
 0x7d7   :  { %v972_v51 = vmul.f32 0.0078125, %v963_v50 }
 0x7d8   :  { %v965_v52 = vpop.xlane.xlu1 %964 }
 0x7d9   :  { %v973_v53 = vmul.f32 0.0078125, %v965_v52  ;;  %v976_v24 = vmul.f32 %v972_v51, %v972_v51  ;;  %v980_v60 = vsub.f32 %v960_v46, %v972_v51  ;;  %v1634_v46 = vld [vmem:[%s2094_s2 + $0x1a0] ss:$28 sps:$4 sm:$0xff]  }
 0x7da   :  { %v969_v23 = vpop.xlane.xlu0 %968  ;;  %1523 = vmatpush3.bf16.msra.mxu0 %v1634_v46 }
 0x7db   :  { %v974_v54 = vmul.f32 0.0078125, %v969_v23  ;;  %v977_v56 = vmul.f32 %v973_v53, %v973_v53  ;;  %v981_v63 = vsub.f32 %v961_v47, %v973_v53 }
 0x7dc   :  { %v971_v55 = vpop.xlane.xlu1 %970 }
 0x7dd   :  { %v978_v57 = vsub.f32 %v974_v54, %v976_v24  ;;  %v975_v58 = vmul.f32 0.0078125, %v971_v55 }
 0x7df   :  { %v982_v28 = vadd.f32 1e-12, %v978_v57  ;;  %v979_v59 = vsub.f32 %v975_v58, %v977_v56 }
 0x7e1   :  { %1655 = vrsqrt.f32 %v982_v28  ;;  %v983_v29 = vadd.f32 1e-12, %v979_v59 }
 0x7e3   :  { %1657 = vrsqrt.f32 %v983_v29 }
 0x7eb   :  { %v1656_v61 = vpop.eup %1655 }
 0x7ec   :  { %v986_v0 = vmul.f32 %v1656_v61, %v980_v60 }
 0x7ed   :  { %v1658_v3 = vpop.eup %1657 }
 0x7ee   :  { %v987_v31 = vmul.f32 %v1658_v3, %v981_v63  ;;  %v988_v4 = vmul.f32 %v986_v0, %v181_v62 }
 0x7f0   :  { %v989_v33 = vmul.f32 %v987_v31, %v181_v62  ;;  %v990_v5 = vadd.f32 %v988_v4, %v182_v30 }
 0x7f2   :  { %v991_v6 = vadd.f32 %v989_v33, %v182_v30 }
 0x7f4   :  { %v995_v10 = vpack.c.bf16 %v991_v6, %v990_v5 }
 0x7f6   :  { %1503 = vmatpush3.bf16.msra.mxu1 %v995_v10 }
 0x7f7   :  { %1419 = vmatprep.subr.bf16.mxu1 %v1611_v9 }
 0x7f9   :  { %1505 = vmatmul.mubr.msk.bf16.vlgmr.msra.gmra.mrb[16].mxu1 %vm459_vm1, %v994_v11 }
 0x7fa   :  { %1420 = vmatpush3.bf16.msra.mxu1 %v1612_v12 }
 0x7fb   :  { %1421 = vmatprep.subr.bf16.mxu1 %v1613_v13 }
 0x7fe   :  { %1422 = vmatpush3.bf16.msra.mxu1 %v1614_v14 }
 0x7ff   :  { %1423 = vmatprep.subr.bf16.mxu1 %v1615_v15 }
 0x802   :  { %1424 = vmatpush3.bf16.msra.mxu1 %v1616_v16 }
 0x803   :  { %1425 = vmatprep.subr.bf16.mxu1 %v1617_v17 }
 0x806   :  { %1426 = vmatpush3.bf16.msra.mxu1 %v1618_v18 }
 0x807   :  { %1427 = vmatprep.subr.bf16.mxu1 %v1619_v19 }
 0x80a   :  { %1428 = vmatpush3.bf16.msra.mxu1 %v1620_v20 }
 0x80b   :  { %1429 = vmatprep.subr.bf16.mxu1 %v1621_v21 }
 0x80e   :  { %1430 = vmatpush3.bf16.msra.mxu1 %v1622_v22 }
 0x80f   :  { %1431 = vmatprep.subr.bf16.mxu1 %v1623_v25 }
 0x812   :  { %1432 = vmatpush3.bf16.msra.mxu1 %v1624_v26 }
 0x813   :  { %1433 = vmatprep.subr.bf16.mxu1 %v1625_v27 }
 0x816   :  { %1434 = vmatpush3.bf16.msra.mxu1 %v1626_v32 }
 0x8cc   :  { %v1033_v37 = vpop.f32.mrb[16].mxu1 }
 0x8cd   :  { %v1506_v38 = vpop.f32.mrb[17].mxu1  ;;  %v1040_v1 = vpack.c.bf16 %v1033_v37, %v1033_v37 }
 0x8ce   :  { %v1036_v39 = vpop.f32.mrb[18].mxu1 }
 0x8cf   :  { %v1041_v40 = vpack.c.bf16 %v1036_v39, %v1036_v39  ;;  %v1507_v41 = vpop.f32.mrb[19].mxu1 }
 0x8d1   :  { %1170 = vmatprep.mubr.bf16.mxu1 %v1041_v40 }
 0x8d2   :  { %1171 = vmatmul.mubr.bf16.vlgmr.msra.gmra.mrb[20].mxu1 %v1040_v1 }
 0x9a5   :  { %v1435_v47 = vpop.f32.mrb[20].mxu1 }
 0x9a6   :  { %v1436_v49 = vpop.f32.mrb[21].mxu1 }
 0x9a7   :  { %v1437_v50 = vadd.f32 %v1436_v49, %v1435_v47  ;;  %v1438_v51 = vpop.f32.mrb[22].mxu1 }
 0x9a8   :  { %v1439_v52 = vpop.f32.mrb[23].mxu1 }
 0x9a9   :  { %v1173_v53 = vadd.f32 %v1437_v50, %v175_v48 }
 0x9ab   :  { %1659 = vtanh.f32 %v1173_v53 }
 0x9b5   :  { %v1660_v23 = vpop.eup %1659 }
 0x9b6   :  { %v1179_v24 = vpack.c.bf16 %v1660_v23, %v1660_v23 }
 0x9b8   :  { %1525 = vmatmul.mubr.bf16.vlgmr.msra.gmra.mrb[12].mxu0 %v1179_v24 }
 0xa8b   :  { %v1262_v54 = vpop.f32.mrb[12].mxu0 }
 0xa8c   :  { %v1263_v55 = vadd.f32 %v1262_v54, %v176_v2  ;;  %v1526_v56 = vpop.f32.mrb[13].mxu0 }
 0xa8d   :  { %v1265_v57 = vpop.f32.mrb[14].mxu0 }
 0xa8e   :  { %1268 = vmax.xlane.f32.xlu0 %v1263_v55  ;;  %v1527_v58 = vpop.f32.mrb[15].mxu0 }
 0xb1b   :  { %v1269_v28 = vpop.xlane.xlu0 %1268 }
 0xb1c   :  { %v1270_v59 = vsub.f32 %v1263_v55, %v1269_v28 }
 0xb1e   :  { %v1271_v29 = vmul.f32 1.442695, %v1270_v59 }
 0xb20   :  { %1661 = vpow2.f32 %v1271_v29 }
 0xb2a   :  { %v1662_v60 = vpop.eup %1661 }
 0xb2b   :  { %1273 = vadd.xlane.f32.xlu1 %v1662_v60 }
 0xbb8   :  { %v1274_v61 = vpop.xlane.xlu1 %1273 }
 0xbb9   :  { %1663 = vrcp.f32 %v1274_v61 }
 0xbc3   :  { %v1664_v62 = vpop.eup %1663 }
 0xbc4   :  { %v1276_v63 = vmul.f32 %v1664_v62, %v1662_v60 }
 0xbc6   :  { %1277 = vst [vmem:[%s2100_s6] sm:$0xff] %v1276_v63 }

</bundles_post_ra>
